<compile_context>
chip_gen: v5e
topology: v5e:2x2
jax: 0.10.0
libtpu: 0.0.40
codegen_flags: <defaults>
</compile_context>

<pallas_src>
import functools
import math

import jax
import jax.numpy as jnp
from jax import lax
from jax.experimental import pallas as pl
from jax.experimental.pallas import tpu as pltpu


def _au_loss_kernel(yp_ref, yt_ref, sum_ref, cnt_ref, *,
                    ignore, m_rows, tile_m, lanes):
    split = pl.program_id(0)
    step = pl.program_id(1)
    steps = pl.num_programs(1)

    @pl.when(step == 0)
    def _init():
        sum_ref[...] = jnp.zeros_like(sum_ref)
        cnt_ref[...] = jnp.zeros_like(cnt_ref)

    p = yp_ref[...].astype(jnp.float32)          # (tile_m, lanes)
    t = yt_ref[...].astype(jnp.float32)

    # Row-bound mask.  Ragged last blocks and fully out-of-range (clamped)
    # blocks only ever see rows >= m_rows, which are masked out here, so any
    # garbage data they carry (even NaN) never reaches the accumulators.
    blk = split * steps + step                   # intended (unclamped) block id
    row0 = blk * tile_m
    rows = row0 + lax.broadcasted_iota(jnp.int32, (tile_m, lanes), 0)
    valid = jnp.logical_and(t != jnp.float32(ignore), rows < m_rows)

    # PyTorch nn.BCELoss clamps the log terms at -100.
    log_p = jnp.maximum(jnp.log(p), -100.0)
    log_1mp = jnp.maximum(jnp.log(1.0 - p), -100.0)
    # nb == -(BCE); the sign is flipped once in the wrapper.
    nb = log_1mp + t * (log_p - log_1mp)
    nb = jnp.where(valid, nb, 0.0)               # where (not *mask): NaN-safe
    cm = valid.astype(jnp.float32)

    # Fold the (tile_m, lanes) block down to the small (8, lanes) accumulator
    # with plain vector adds; the cross-lane work happens only in the wrapper.
    if tile_m % 8 == 0:
        sum_ref[...] += jnp.sum(nb.reshape(tile_m // 8, 8, lanes), axis=0)
        cnt_ref[...] += jnp.sum(cm.reshape(tile_m // 8, 8, lanes), axis=0)
    else:
        # Tiny-input fallback (tile_m not a multiple of 8): one sublane reduce.
        sum_ref[0:1, :] += jnp.sum(nb, axis=0, keepdims=True)
        cnt_ref[0:1, :] += jnp.sum(cm, axis=0, keepdims=True)


def au_loss(y_pred, y_true, ignore=-1, *, tile_rows=1024, num_splits=1):
    """JAX/Pallas equivalent of AULoss.forward.  Returns a scalar float32.

    y_pred, y_true: (N, C) with C == 12 in the original module (any C works).
    num_splits=2 is recommended on v7x (2 TensorCores); 1 on v5e/v6e.
    """
    n, c = y_pred.shape
    assert y_true.shape == (n, c)

    lanes = (c * 128) // math.gcd(c, 128)        # lcm(c, 128); 384 for c == 12
    f = n * c

    # Free row-major reinterpretation of the (N, C) arrays (no copy).
    yp = jnp.reshape(y_pred, (-1,))
    yt = jnp.reshape(y_true, (-1,))

    rem = f % lanes
    if rem:
        # Only hit when N % (lanes // c) != 0 (N % 32 for C=12): one small flat
        # pad so the lane-dense reshape is legal.  Pad targets carry `ignore`
        # so they never count as valid; pad preds of 0.5 keep the logs finite.
        pad = lanes - rem
        yp = jnp.pad(yp, (0, pad), constant_values=0.5)
        yt = jnp.pad(yt, (0, pad), constant_values=float(ignore))
    m_rows = (f + (lanes - rem) % lanes) // lanes
    yp = jnp.reshape(yp, (m_rows, lanes))
    yt = jnp.reshape(yt, (m_rows, lanes))

    tile_rows = max(8, (int(tile_rows) // 8) * 8)
    tile = m_rows if m_rows <= tile_rows else tile_rows
    nblocks = pl.cdiv(m_rows, tile)
    num_splits = max(1, int(num_splits))
    steps = pl.cdiv(nblocks, num_splits)
    last_block = nblocks - 1

    kernel = functools.partial(_au_loss_kernel, ignore=ignore,
                               m_rows=m_rows, tile_m=tile, lanes=lanes)

    # Clamp the block index so grid overshoot never issues an out-of-range DMA;
    # the kernel's row-bound mask (built from the unclamped program ids) zeroes
    # any contribution from such blocks.
    in_spec = pl.BlockSpec(
        (tile, lanes), lambda s, i: (jnp.minimum(s * steps + i, last_block), 0))
    out_spec = pl.BlockSpec((8, lanes), lambda s, i: (s, 0))

    item_bytes = y_pred.dtype.itemsize + y_true.dtype.itemsize
    block_elems = tile * lanes
    vmem_limit = int(min(
        64 * 2**20,
        max(16 * 2**20,
            2 * block_elems * item_bytes        # double-buffered inputs
            + 12 * block_elems * 4              # f32 intermediates headroom
            + (2 << 20))))

    sums, cnts = pl.pallas_call(
        kernel,
        out_shape=(jax.ShapeDtypeStruct((num_splits * 8, lanes), jnp.float32),
                   jax.ShapeDtypeStruct((num_splits * 8, lanes), jnp.float32)),
        grid=(num_splits, steps),
        in_specs=[in_spec, in_spec],
        out_specs=(out_spec, out_spec),
        compiler_params=pltpu.CompilerParams(
            dimension_semantics=("parallel", "arbitrary"),
            vmem_limit_bytes=vmem_limit),
        cost_estimate=pl.CostEstimate(
            flops=int(10 * f),
            transcendentals=int(2 * f),
            bytes_accessed=int(f * item_bytes)),
    )(yp, yt)

    # Tiny wrapper-side epilogue: combine splits, fold the 384 lane slots back
    # to the C columns (slot l -> column l % C), divide once, sum columns.
    slot_sum = jnp.sum(sums, axis=0)                            # (lanes,)
    slot_cnt = jnp.sum(cnts, axis=0)                            # (lanes,)
    col_sum = jnp.sum(jnp.reshape(slot_sum, (lanes // c, c)), axis=0)   # (C,)
    col_cnt = jnp.sum(jnp.reshape(slot_cnt, (lanes // c, c)), axis=0)   # (C,)
    per_col = jnp.where(col_cnt > 0.0,
                        -col_sum / jnp.maximum(col_cnt, 1.0),   # negate: nb=-bce
                        0.0)
    return jnp.sum(per_col)


def _au_loss_ref(y_pred, y_true, ignore=-1):
    """Pure-JAX reference matching the PyTorch per-column BCELoss loop."""
    valid = y_true != ignore
    p = y_pred.astype(jnp.float32)
    t = y_true.astype(jnp.float32)
    log_p = jnp.maximum(jnp.log(p), -100.0)
    log_1mp = jnp.maximum(jnp.log(1.0 - p), -100.0)
    bce = -(t * log_p + (1.0 - t) * log_1mp)
    bce = jnp.where(valid, bce, 0.0)
    cnt = jnp.sum(valid, axis=0).astype(jnp.float32)
    s = jnp.sum(bce, axis=0)
    per_col = jnp.where(cnt > 0.0, s / jnp.maximum(cnt, 1.0), 0.0)
    return jnp.sum(per_col)


def _make_inputs(key, n, c, ignore, dtype=jnp.float32):
    k1, k2, k3 = jax.random.split(key, 3)
    y_pred = jax.nn.sigmoid(jax.random.normal(k1, (n, c), dtype=jnp.float32))
    labels = jax.random.bernoulli(k2, 0.5, (n, c)).astype(jnp.float32)
    mask = jax.random.bernoulli(k3, 0.3, (n, c))
    y_true = jnp.where(mask, jnp.float32(ignore), labels)
    return y_pred.astype(dtype), y_true.astype(dtype)


if __name__ == "__main__":
    key = jax.random.PRNGKey(0)
    keys = jax.random.split(key, 8)
    IGNORE = -1
    C = 12

    def check(y_pred, y_true, **kw):
        out = au_loss(y_pred, y_true, ignore=IGNORE, **kw)
        out = jax.block_until_ready(out)
        ref = _au_loss_ref(y_pred, y_true, ignore=IGNORE)
        assert jnp.allclose(out, ref, rtol=1e-5, atol=1e-5), (out, ref, kw)

    # Case 1: aligned N (N % 32 == 0 -> zero-copy path), tiny-row fallback path.
    yp1, yt1 = _make_inputs(keys[0], 64, C, IGNORE)
    check(yp1, yt1)

    # Case 2: unaligned N (pad path), small tiles, 2 splits, ragged + clamped
    # overshoot blocks, multi-step accumulation.
    yp2, yt2 = _make_inputs(keys[1], 600, C, IGNORE)
    check(yp2, yt2, tile_rows=8, num_splits=2)

    # Case 3: aligned N with a ragged last block and a clamped overshoot block.
    yp3, yt3 = _make_inputs(keys[2], 640, C, IGNORE)
    check(yp3, yt3, tile_rows=8, num_splits=2)

    # Case 4: one column entirely ignored -> contributes exactly 0.
    yp4, yt4 = _make_inputs(keys[3], 32, C, IGNORE)
    yt4 = yt4.at[:, 5].set(jnp.float32(IGNORE))
    check(yp4, yt4)

    # Case 5: bf16 inputs through the DMA (math stays f32 in-kernel).
    yp5, yt5 = _make_inputs(keys[4], 256, C, IGNORE, dtype=jnp.bfloat16)
    check(yp5, yt5, num_splits=2)

    print("KERNEL_OK")
</pallas_src>

<mosaic_0001>
module attributes {stable_mosaic.version = 11 : i64} {
  func.func @_au_loss_kernel(%arg0: i32, %arg1: i32, %arg2: memref<2x384xf32, #tpu.memory_space<vmem>>, %arg3: memref<2x384xf32, #tpu.memory_space<vmem>>, %arg4: memref<8x384xf32, #tpu.memory_space<vmem>>, %arg5: memref<8x384xf32, #tpu.memory_space<vmem>>) attributes {dimension_semantics = [#tpu.dimension_semantics<parallel>, #tpu.dimension_semantics<arbitrary>], iteration_bounds = array<i64: 1, 1>, scalar_prefetch = 0 : i64, scratch_operands = 0 : i64, tpu.core_type = #tpu.core_type<tc>, window_params = [{transform_indices = @transform_0, window_bounds = array<i64: 2, 384>}, {transform_indices = @transform_1, window_bounds = array<i64: 2, 384>}, {transform_indices = @transform_2, window_bounds = array<i64: 8, 384>}, {transform_indices = @transform_3, window_bounds = array<i64: 8, 384>}]} {
    %c0_i32 = arith.constant 0 : i32
    %0 = arith.cmpi eq, %arg1, %c0_i32 : i32
    %1 = arith.extui %0 : i1 to i32
    %c0_i32_0 = arith.constant 0 : i32
    %2 = arith.cmpi ne, %1, %c0_i32_0 : i32
    scf.if %2 {
      %cst_19 = arith.constant 0.000000e+00 : f32
      %41 = vector.broadcast %cst_19 : f32 to vector<8x384xf32>
      %c0_20 = arith.constant 0 : index
      %c0_21 = arith.constant 0 : index
      %42 = vector.load %arg4[%c0_20, %c0_21] : memref<8x384xf32, #tpu.memory_space<vmem>>, vector<8x384xf32>
      tpu.vector_store %arg4[%c0_20, %c0_21], %41 {strides = array<i32>} : memref<8x384xf32, #tpu.memory_space<vmem>>, vector<8x384xf32>,
      %cst_22 = arith.constant 0.000000e+00 : f32
      %43 = vector.broadcast %cst_22 : f32 to vector<8x384xf32>
      %c0_23 = arith.constant 0 : index
      %c0_24 = arith.constant 0 : index
      %44 = vector.load %arg5[%c0_23, %c0_24] : memref<8x384xf32, #tpu.memory_space<vmem>>, vector<8x384xf32>
      tpu.vector_store %arg5[%c0_23, %c0_24], %43 {strides = array<i32>} : memref<8x384xf32, #tpu.memory_space<vmem>>, vector<8x384xf32>,
    } else {
    }
    %c0 = arith.constant 0 : index
    %c0_1 = arith.constant 0 : index
    %3 = vector.load %arg2[%c0, %c0_1] : memref<2x384xf32, #tpu.memory_space<vmem>>, vector<2x384xf32>
    %c0_2 = arith.constant 0 : index
    %c0_3 = arith.constant 0 : index
    %4 = vector.load %arg3[%c0_2, %c0_3] : memref<2x384xf32, #tpu.memory_space<vmem>>, vector<2x384xf32>
    %c1_i32 = arith.constant 1 : i32
    %5 = arith.muli %arg0, %c1_i32 : i32
    %6 = arith.addi %5, %arg1 : i32
    %c2_i32 = arith.constant 2 : i32
    %7 = arith.muli %6, %c2_i32 : i32
    %8 = tpu.iota {dimensions = array<i32: 0>} : vector<2x384xi32>
    %9 = vector.broadcast %7 : i32 to vector<2x384xi32>
    %10 = arith.addi %9, %8 : vector<2x384xi32>
    %cst = arith.constant -1.000000e+00 : f32
    %11 = vector.broadcast %cst : f32 to vector<2x384xf32>
    %12 = arith.cmpf one, %4, %11 : vector<2x384xf32>
    %c2_i32_4 = arith.constant 2 : i32
    %13 = vector.broadcast %c2_i32_4 : i32 to vector<2x384xi32>
    %14 = arith.cmpi slt, %10, %13 : vector<2x384xi32>
    %15 = arith.andi %12, %14 : vector<2x384xi1>
    %16 = math.log %3 : vector<2x384xf32>
    %cst_5 = arith.constant -1.000000e+02 : f32
    %17 = vector.broadcast %cst_5 : f32 to vector<2x384xf32>
    %18 = arith.maximumf %16, %17 : vector<2x384xf32>
    %cst_6 = arith.constant 1.000000e+00 : f32
    %19 = vector.broadcast %cst_6 : f32 to vector<2x384xf32>
    %20 = arith.subf %19, %3 : vector<2x384xf32>
    %21 = math.log %20 : vector<2x384xf32>
    %cst_7 = arith.constant -1.000000e+02 : f32
    %22 = vector.broadcast %cst_7 : f32 to vector<2x384xf32>
    %23 = arith.maximumf %21, %22 : vector<2x384xf32>
    %24 = arith.subf %18, %23 : vector<2x384xf32>
    %25 = arith.mulf %4, %24 : vector<2x384xf32>
    %26 = arith.addf %23, %25 : vector<2x384xf32>
    %cst_8 = arith.constant 0.000000e+00 : f32
    %27 = vector.broadcast %cst_8 : f32 to vector<2x384xf32>
    %28 = arith.select %15, %26, %27 : vector<2x384xi1>, vector<2x384xf32>
    %29 = arith.extui %15 : vector<2x384xi1> to vector<2x384xi32>
    %30 = arith.sitofp %29 : vector<2x384xi32> to vector<2x384xf32>
    %c0_9 = arith.constant 0 : index
    %c0_10 = arith.constant 0 : index
    %31 = vector.load %arg4[%c0_9, %c0_10] : memref<8x384xf32, #tpu.memory_space<vmem>>, vector<1x384xf32>
    %cst_11 = arith.constant dense<0.000000e+00> : vector<384xf32>
    %32 = vector.multi_reduction <add>, %28, %cst_11 [0] : vector<2x384xf32> to vector<384xf32>
    %33 = vector.shape_cast %32 : vector<384xf32> to vector<1x384xf32>
    %34 = arith.addf %31, %33 : vector<1x384xf32>
    %c0_12 = arith.constant 0 : index
    %c0_13 = arith.constant 0 : index
    %35 = vector.load %arg4[%c0_12, %c0_13] : memref<8x384xf32, #tpu.memory_space<vmem>>, vector<1x384xf32>
    tpu.vector_store %arg4[%c0_12, %c0_13], %34 {strides = array<i32>} : memref<8x384xf32, #tpu.memory_space<vmem>>, vector<1x384xf32>,
    %c0_14 = arith.constant 0 : index
    %c0_15 = arith.constant 0 : index
    %36 = vector.load %arg5[%c0_14, %c0_15] : memref<8x384xf32, #tpu.memory_space<vmem>>, vector<1x384xf32>
    %cst_16 = arith.constant dense<0.000000e+00> : vector<384xf32>
    %37 = vector.multi_reduction <add>, %30, %cst_16 [0] : vector<2x384xf32> to vector<384xf32>
    %38 = vector.shape_cast %37 : vector<384xf32> to vector<1x384xf32>
    %39 = arith.addf %36, %38 : vector<1x384xf32>
    %c0_17 = arith.constant 0 : index
    %c0_18 = arith.constant 0 : index
    %40 = vector.load %arg5[%c0_17, %c0_18] : memref<8x384xf32, #tpu.memory_space<vmem>>, vector<1x384xf32>
    tpu.vector_store %arg5[%c0_17, %c0_18], %39 {strides = array<i32>} : memref<8x384xf32, #tpu.memory_space<vmem>>, vector<1x384xf32>,
    return
  }
  func.func @transform_0(%arg0: i32, %arg1: i32) -> (i32, i32) {
    %c1_i32 = arith.constant 1 : i32
    %0 = arith.muli %arg0, %c1_i32 : i32
    %1 = arith.addi %0, %arg1 : i32
    %c0_i32 = arith.constant 0 : i32
    %2 = arith.minsi %1, %c0_i32 : i32
    %c0_i32_0 = arith.constant 0 : i32
    %c0_i32_1 = arith.constant 0 : i32
    return %2, %c0_i32_0 : i32, i32
  }
  func.func @transform_1(%arg0: i32, %arg1: i32) -> (i32, i32) {
    %c1_i32 = arith.constant 1 : i32
    %0 = arith.muli %arg0, %c1_i32 : i32
    %1 = arith.addi %0, %arg1 : i32
    %c0_i32 = arith.constant 0 : i32
    %2 = arith.minsi %1, %c0_i32 : i32
    %c0_i32_0 = arith.constant 0 : i32
    %c0_i32_1 = arith.constant 0 : i32
    return %2, %c0_i32_0 : i32, i32
  }
  func.func @transform_2(%arg0: i32, %arg1: i32) -> (i32, i32) {
    %c0_i32 = arith.constant 0 : i32
    %c0_i32_0 = arith.constant 0 : i32
    return %arg0, %c0_i32 : i32, i32
  }
  func.func @transform_3(%arg0: i32, %arg1: i32) -> (i32, i32) {
    %c0_i32 = arith.constant 0 : i32
    %c0_i32_0 = arith.constant 0 : i32
    return %arg0, %c0_i32 : i32, i32
  }
}

</mosaic_0001>

<bundles_post_ra>
// kernel: tpu_custom_call.1
= control target key start
LH: loop header
LB: loop body
LE: loop exit
PB: predicated region body
PF: predicated region fallthrough
CT: control target
= control target key end

     0   :  { %9 = vsyncpa [#allocation3], 0  ;;  %s402_s0 = inlined_call_operand.hbm [shape: f32[2,384], index: 0, kind: input, shape index: {}]   ;;  %s403_s1 = inlined_call_operand.hbm [shape: f32[2,384], index: 1, kind: input, shape index: {}]   ;;  %s404_s2 = inlined_call_operand.hbm [shape: f32[8,384], index: 2, kind: output, shape index: {0}]   ;;  %s405_s3 = inlined_call_operand.hbm [shape: f32[8,384], index: 3, kind: output, shape index: {1}]  }
   0x1   :  { %10 = vsyncpa [#allocation6], 0 }
   0x2   :  { %11 = vsyncpa [#allocation4], 0 }
   0x3   :  { %12 = vsyncpa [#allocation9], 0  ;;  %s24_s14 = sshll.u32 %s402_s0, 4  ;;  %s343_s15 = smov [#allocation2]   ;;  %s25_s14 = int_to_ptr.hbm [resolvable:$true] %s24_s14 }
   0x4   :  { %s26_s16 = sshll.u32 %s343_s15, 4  ;;  %s41_s19 = sshll.u32 %s403_s1, 4  ;;  %s27_s16 = int_to_ptr.vmem [resolvable:$true] %s26_s16  ;;  %s42_s19 = int_to_ptr.hbm [resolvable:$true] %s41_s19 }
   0x5   :  { %29 = dma.hbm_to_vmem [thread:$0]  %s25_s14, 96, %s27_s16, [#allocation3]  }
   0x6   :  { %s344_s20 = smov [#allocation5]  }
   0x7   :  { %s43_s21 = sshll.u32 %s344_s20, 4  ;;  %s44_s21 = int_to_ptr.vmem [resolvable:$true] %s43_s21 }
   0x8   :  { %46 = dma.hbm_to_vmem [thread:$0]  %s42_s19, 96, %s44_s21, [#allocation6]  }
   0x9   :  { %335 = dma.done.wait [#allocation3], 96  }
   0xa   :  { %336 = vsyncadd [#allocation3], 4294967200 }
   0xb   :  { %337 = dma.done.wait [#allocation6], 96  }
   0xc   :  { %338 = vsyncadd [#allocation6], 4294967200  ;;  %v345_v0 = vmov 0.0   ;;  %v75_v1 = vlaneseq  ;;  %v71_v2 = vld [vmem:[#allocation2] sm:$0x3f]  ;;  %v347_v9 = vmov 0  }
   0xd   :  { %65 = vst [vmem:[#allocation7] sm:$0xff] %v345_v0  ;;  %235 = vlog2.f32 %v71_v2  ;;  %v91_v4 = vsub.f32 1.0, %v71_v2  ;;  %v346_v5 = vmov 269488144   ;;  %v72_v17 = vld [vmem:[#allocation5] sm:$0x3f] }
   0xe   :  { %66 = vst [vmem:[#allocation7 + $0x8] sm:$0xff] %v345_v0  ;;  %v76_v3 = vshrl.u32 %v75_v1, 7  ;;  %v83_v6 = vunpack.c.l.s4 %v346_v5  ;;  %vm79_vm1 = vcmp.ne.f32.partialorder %v72_v17, -1.0  ;;  %vm110_vm4 = vcmask 1041408   ;;  %s196_s22 = sshll.u32 %s404_s2, 4  ;;  %s348_s23 = smov [#allocation7]   ;;  %s197_s22 = int_to_ptr.hbm [resolvable:$true] %s196_s22 }
   0xf   :  { %67 = vst [vmem:[#allocation7 + $0x10] sm:$0xff] %v345_v0  ;;  %237 = vlog2.f32 %v91_v4  ;;  %vm137_vm5 = vcmask 1040384   ;;  %s194_s24 = sshll.u32 %s348_s23, 4  ;;  %vm388_vm6 = vcmp.lt.s32.totalorder %v75_v1, 384  ;;  %s349_s2 = smov [#allocation8]   ;;  %s195_s24 = int_to_ptr.vmem [resolvable:$true] %s194_s24 }
  0x10   :  { %68 = vst [vmem:[#allocation8] sm:$0xff] %v345_v0  ;;  %vm80_vm0 = vcmp.lt.s32.totalorder %v76_v3, 2  ;;  %v84_v7 = vunpack.c.0.s8 %v83_v6  ;;  %s205_s25 = sshll.u32 %s349_s2, 4  ;;  %s207_s28 = sshll.u32 %s405_s3, 4  ;;  %s206_s25 = int_to_ptr.vmem [resolvable:$true] %s205_s25  ;;  %s208_s28 = int_to_ptr.hbm [resolvable:$true] %s207_s28 }
  0x11   :  { %69 = vst [vmem:[#allocation8 + $0x8] sm:$0xff] %v345_v0  ;;  %v81_v10 = vsel %vm80_vm0, 1, %v347_v9 }
  0x12   :  { %70 = vst [vmem:[#allocation8 + $0x10] sm:$0xff] %v345_v0  ;;  %v85_v13 = vperm.slane %v81_v10, %v84_v7 }
  0x13   :  { %v236_v8 = vpop.eup %235 }
  0x14   :  { %v89_v11 = vmul.f32 0.6931472, %v236_v8  ;;  %vm86_vm2 = vcmp.ne.s32.totalorder %v85_v13, 0 }
  0x15   :  { %v238_v12 = vpop.eup %237  ;;  %vm87_vm3 = vmand %vm79_vm1, %vm86_vm2 }
  0x16   :  { %v90_v14 = vmax.f32 %v89_v11, -100.0  ;;  %v93_v15 = vmul.f32 0.6931472, %v238_v12  ;;  %v227_v22 = vsel %vm87_vm3, 1.0, %v345_v0 }
  0x17   :  { %v101_v61 = vld [vmem:[#allocation7] ss:$8 sm:$0x7] }
  0x18   :  { %v94_v16 = vmax.f32 %v93_v15, -100.0 }
  0x1a   :  { %v95_v18 = vsub.f32 %v90_v14, %v94_v16 }
  0x1c   :  { %v96_v19 = vmul.f32 %v95_v18, %v72_v17 }
  0x1e   :  { %v97_v20 = vadd.f32 %v96_v19, %v94_v16  ;;  %v148_v16 = vld [vmem:[#allocation8] ss:$8 sm:$0x7] }
  0x20   :  { %v98_v21 = vsel %vm87_vm3, %v97_v20, 0.0 }
  0x21   :  { %103 = vst [vmem:[#allocation1] ss:$4 sm:$0xff] %v98_v21 }
  0x28   :  { %v104_v23 = vld.sshfl [vmem:[#allocation1] sm:$0xff pattern:$0x73625140]  ;;  %v105_v24 = vld.sshfl [vmem:[#allocation1 + $0x8] sm:$0xff pattern:$0x73625140] }
  0x29   :  { %v106_v25 = vld.sshfl [vmem:[#allocation1 + $0x10] sm:$0xff pattern:$0x73625140]  ;;  %v111_v26 = vsel %vm110_vm4, %v104_v23, 0.0  ;;  %v118_v27 = vsel %vm110_vm4, %v105_v24, 0.0 }
  0x2a   :  { %v112_v28 = vrot.slane %v111_v26, 4  ;;  %v119_v29 = vrot.slane %v118_v27, 4  ;;  %v125_v30 = vsel %vm110_vm4, %v106_v25, 0.0  ;;  %150 = vst [vmem:[#allocation1] ss:$4 sm:$0xff] %v227_v22 }
  0x2b   :  { %v126_v31 = vrot.slane %v125_v30, 4 }
  0x2c   :  { %v113_v32 = vadd.f32 %v112_v28, %v111_v26  ;;  %v120_v33 = vadd.f32 %v119_v29, %v118_v27 }
  0x2d   :  { %v127_v34 = vadd.f32 %v126_v31, %v125_v30 }
  0x2e   :  { %v114_v35 = vrot.slane %v113_v32, 2  ;;  %v121_v36 = vrot.slane %v120_v33, 2 }
  0x2f   :  { %v128_v37 = vrot.slane %v127_v34, 2 }
  0x30   :  { %v115_v38 = vadd.f32 %v114_v35, %v113_v32  ;;  %v122_v39 = vadd.f32 %v121_v36, %v120_v33 }
  0x31   :  { %v129_v40 = vadd.f32 %v128_v37, %v127_v34  ;;  %v151_v41 = vld.sshfl [vmem:[#allocation1] sm:$0xff pattern:$0x73625140]  ;;  %v152_v42 = vld.sshfl [vmem:[#allocation1 + $0x8] sm:$0xff pattern:$0x73625140] }
  0x32   :  { %v116_v43 = vrot.slane %v115_v38, 1  ;;  %v123_v44 = vrot.slane %v122_v39, 1  ;;  %v153_v45 = vld.sshfl [vmem:[#allocation1 + $0x10] sm:$0xff pattern:$0x73625140]  ;;  %v157_v46 = vsel %vm110_vm4, %v151_v41, 0.0 }
  0x33   :  { %v130_v47 = vrot.slane %v129_v40, 1  ;;  %v158_v48 = vrot.slane %v157_v46, 4  ;;  %v164_v49 = vsel %vm110_vm4, %v152_v42, 0.0  ;;  %v171_v50 = vsel %vm110_vm4, %v153_v45, 0.0 }
  0x34   :  { %v124_v51 = vadd.f32 %v123_v44, %v122_v39  ;;  %v165_v52 = vrot.slane %v164_v49, 4  ;;  %v172_v53 = vrot.slane %v171_v50, 4  ;;  %v117_v56 = vadd.f32 %v116_v43, %v115_v38 }
  0x35   :  { %v131_v54 = vadd.f32 %v130_v47, %v129_v40  ;;  %v159_v55 = vadd.f32 %v158_v48, %v157_v46 }
  0x36   :  { %v135_v57 = vrot.slane %v124_v51, 7  ;;  %v166_v58 = vadd.f32 %v165_v52, %v164_v49  ;;  %v173_v59 = vadd.f32 %v172_v53, %v171_v50 }
  0x37   :  { %v136_v60 = vrot.slane %v131_v54, 6  ;;  %v160_v62 = vrot.slane %v159_v55, 2 }
  0x38   :  { %v138_v63 = vsel %vm137_vm5, %v117_v56, %v135_v57  ;;  %v167_v0 = vrot.slane %v166_v58, 2  ;;  %v174_v2 = vrot.slane %v173_v59, 2 }
  0x39   :  { %v139_v4 = vsel %vm110_vm4, %v138_v63, %v136_v60  ;;  %v161_v5 = vadd.f32 %v160_v62, %v159_v55 }
  0x3a   :  { %v141_v6 = vadd.f32 %v139_v4, %v101_v61  ;;  %v168_v7 = vadd.f32 %v167_v0, %v166_v58  ;;  %v175_v8 = vadd.f32 %v174_v2, %v173_v59 }
  0x3b   :  { %v162_v9 = vrot.slane %v161_v5, 1 }
  0x3c   :  { %146 = vst.msk [vmem:[#allocation7] ss:$8 sm:$0x7] %vm388_vm6, %v141_v6  ;;  %v169_v10 = vrot.slane %v168_v7, 1  ;;  %v176_v11 = vrot.slane %v175_v8, 1 }
  0x3d   :  { %199 = dma.vmem_to_hbm [thread:$0]  %s195_s24, 384, %s197_s22, [#allocation4]   ;;  %v163_v13 = vadd.f32 %v162_v9, %v161_v5 }
  0x3e   :  { %v170_v12 = vadd.f32 %v169_v10, %v168_v7  ;;  %v177_v1 = vadd.f32 %v176_v11, %v175_v8 }
  0x40   :  { %v181_v14 = vrot.slane %v170_v12, 7  ;;  %v182_v15 = vrot.slane %v177_v1, 6 }
  0x42   :  { %v183_v17 = vsel %vm137_vm5, %v163_v13, %v181_v14 }
  0x43   :  { %v184_v18 = vsel %vm110_vm4, %v183_v17, %v182_v15 }
  0x44   :  { %v186_v19 = vadd.f32 %v184_v18, %v148_v16 }
  0x46   :  { %187 = vst.msk [vmem:[#allocation8] ss:$8 sm:$0x7] %vm388_vm6, %v186_v19 }
  0x47   :  { %210 = dma.vmem_to_hbm [thread:$0]  %s206_s25, 384, %s208_s28, [#allocation9]  }
  0x48   :  { %339 = dma.done.wait [#allocation4], 384  }
  0x49   :  { %340 = vsyncadd [#allocation4], 4294966912 }
  0x4a   :  { %341 = dma.done.wait [#allocation9], 384  }
  0x4b   :  { %342 = vsyncadd [#allocation9], 4294966912 }
  0x4c   :  { %219 = vsyncpa [#allocation3], 1 }
  0x4d   :  { %220 = vsyncpa [#allocation6], 1 }
  0x4e   :  { %221 = vsyncpa [#allocation4], 1 }
  0x4f   :  { %222 = vsyncpa [#allocation9], 1 }

</bundles_post_ra>
